<compile_context>
chip_gen: v7x
topology: tpu7x:2x2x1
jax: 0.10.0
libtpu: 0.0.40
codegen_flags: <defaults>
</compile_context>

<pallas_src>
import jax
import jax.numpy as jnp
from jax import lax
from jax.experimental import pallas as pl
from jax.experimental.pallas import tpu as pltpu


def _round_up(n, m):
    return ((n + m - 1) // m) * m


def speech_kernel(x_ref, w1_ref, b1_ref, w2_ref, b2_ref,
                  fw1t_ref, fb1_ref, fw2t_ref, fb2_ref, o_ref):
    """One grid step = BLOCK_B samples, time-major activations.

    x_ref   : (T, BB, Cin) bf16   row r = t*BB + b after flattening
    w1_ref  : (Cin, 3*C1p) bf16   conv1 taps [t-1 | t | t+1] fused along N, each padded to 128
    b1_ref  : (1, C1p)     f32
    w2_ref  : (3*C1p, C2)  bf16   conv2 im2col weight (zero rows for padded channels)
    b2_ref  : (1, C2)      f32
    fw1t_ref: (H, C2)      bf16   fc1 weight transposed, 1/T of the avg-pool folded in
    fb1_ref : (H, 1)       f32
    fw2t_ref: (1, H)       bf16
    fb2_ref : (1, 1)       f32
    o_ref   : (1, 1, BB)   f32    lane-dense output row
    """
    T, bb, cin = x_ref.shape
    c1p = b1_ref.shape[1]
    c2 = b2_ref.shape[1]
    m = T * bb

    # Flatten (T, BB, Cin) -> (T*BB, Cin); BB % 16 == 0 so no (sublane,lane) tile crossing.
    x2 = x_ref[...].reshape(m, cin)

    # ---- conv1 (k=3, pad=1): one MXU launch, taps fused along N (128-lane aligned) -------
    z = jnp.dot(x2, w1_ref[...], preferred_element_type=jnp.float32)      # (m, 3*C1p) f32
    y_m1 = z[:, 0:c1p]             # contribution that needs x[t-1]
    y_0 = z[:, c1p:2 * c1p]        # center tap
    y_p1 = z[:, 2 * c1p:3 * c1p]   # contribution that needs x[t+1]

    zrow = jnp.zeros((bb, c1p), jnp.float32)
    # Time-major rows: the t-1 / t+1 neighbour is exactly +-BB rows => aligned static
    # sublane slices; first/last BB rows (t==0 / t==T-1) take the zero slab ("same" padding).
    h1 = y_0 + b1_ref[...]
    h1 = h1 + jnp.concatenate([zrow, y_m1[:m - bb]], axis=0)
    h1 = h1 + jnp.concatenate([y_p1[bb:], zrow], axis=0)
    h1 = jnp.maximum(h1, 0.0)                                             # (m, C1p) f32

    # ---- conv2 (k=3, pad=1): im2col along K, one MXU launch -------------------------------
    h1b = h1.astype(jnp.bfloat16)
    zrow_b = jnp.zeros((bb, c1p), jnp.bfloat16)
    h1_prev = jnp.concatenate([zrow_b, h1b[:m - bb]], axis=0)
    h1_next = jnp.concatenate([h1b[bb:], zrow_b], axis=0)
    cols = jnp.concatenate([h1_prev, h1b, h1_next], axis=1)               # (m, 3*C1p) bf16
    h2 = jnp.dot(cols, w2_ref[...], preferred_element_type=jnp.float32) + b2_ref[...]
    h2 = jnp.maximum(h2, 0.0)                                             # (m, C2) f32

    # ---- AdaptiveAvgPool1d(1): sum over time (1/T already folded into fc1) ----------------
    pooled = jnp.sum(h2.reshape(T, bb, c2), axis=0)                       # (BB, C2) f32

    # ---- MLP head, transposed so the final write is a lane-dense (1, BB) row --------------
    pooled_b = pooled.astype(jnp.bfloat16)
    z1 = lax.dot_general(fw1t_ref[...], pooled_b,
                         (((1,), (1,)), ((), ())),
                         preferred_element_type=jnp.float32) + fb1_ref[...]   # (H, BB)
    z1 = jnp.maximum(z1, 0.0).astype(jnp.bfloat16)
    z2 = jnp.dot(fw2t_ref[...], z1,
                 preferred_element_type=jnp.float32) + fb2_ref[...]           # (1, BB)

    o_ref[...] = z2.reshape(o_ref.shape)


def speech_model(x_bct, params, block_b=128):
    """x_bct: (B, C_in, T) float (PyTorch NCW).  Returns (B, 1) float32.

    block_b=128 is safe on v5e/v6e/v7x at bf16; raise to 256 on v6e for fewer grid steps.
    """
    B, C_in, T = x_bct.shape
    w1, b1, w2, b2, fw1, fb1, fw2, fb2 = params
    c1 = w1.shape[2]
    c2 = w2.shape[2]
    c1p = _round_up(c1, 128)                              # pad conv1 channels to a lane group

    # conv1 taps fused along the output axis, each zero-padded to c1p lanes: (Cin, 3*c1p).
    w1_cat = jnp.concatenate(
        [jnp.pad(w1[k], ((0, 0), (0, c1p - c1))) for k in range(3)], axis=1
    ).astype(jnp.bfloat16)
    b1p = jnp.pad(b1, ((0, 0), (0, c1p - c1))).astype(jnp.float32)        # (1, c1p)

    # conv2 im2col weight with zero rows for the padded channels: (3*c1p, c2).
    w2_flat = jnp.pad(w2, ((0, 0), (0, c1p - c1), (0, 0))).reshape(3 * c1p, c2)
    w2_flat = w2_flat.astype(jnp.bfloat16)
    b2f = b2.astype(jnp.float32)

    # Transposed MLP head; fold the 1/T of AdaptiveAvgPool into fc1.
    fw1t = (fw1.T / T).astype(jnp.bfloat16)               # (H, c2)
    fb1c = fb1.reshape(-1, 1).astype(jnp.float32)         # (H, 1)
    fw2t = fw2.T.astype(jnp.bfloat16)                     # (1, H)
    fb2f = fb2.astype(jnp.float32)                        # (1, 1)

    # Batch blocking: multiple of 16 (bf16 sublane packing); cap at ceil(B/2) so the
    # "parallel" batch axis has >=2 grid steps to shard across both TCs on v7x.
    bb = max(1, min(block_b, pl.cdiv(B, 2)))
    bb = _round_up(bb, 16)
    nblk = pl.cdiv(B, bb)
    b_pad = nblk * bb

    # Time-major channels-last slab (T, B_pad, Cin): neighbour taps become +-bb aligned rows.
    x = jnp.transpose(x_bct, (2, 0, 1)).astype(jnp.bfloat16)
    if b_pad != B:
        x = jnp.pad(x, ((0, 0), (0, b_pad - B), (0, 0)))

    def resident(arr):                                    # constant-index full-array block
        return pl.BlockSpec(arr.shape, lambda i: (0, 0))

    out = pl.pallas_call(
        speech_kernel,
        out_shape=jax.ShapeDtypeStruct((nblk, 1, bb), jnp.float32),
        grid=(nblk,),
        in_specs=[
            pl.BlockSpec((T, bb, C_in), lambda i: (0, i, 0)),    # per-block activation slab
            resident(w1_cat), resident(b1p),
            resident(w2_flat), resident(b2f),
            resident(fw1t), resident(fb1c),
            resident(fw2t), resident(fb2f),
        ],
        out_specs=pl.BlockSpec((1, 1, bb), lambda i: (i, 0, 0)),  # lane-dense per-block row
        compiler_params=pltpu.CompilerParams(
            dimension_semantics=("parallel",)),                   # shard batch grid over TCs
    )(x, w1_cat, b1p, w2_flat, b2f, fw1t, fb1c, fw2t, fb2f)

    return out.reshape(b_pad, 1)[:B]


def reference(x_bct, params):
    """Pure-JAX fp32 reference matching the PyTorch forward pass."""
    w1, b1, w2, b2, fw1, fb1, fw2, fb2 = params
    dn = ("NCH", "OIH", "NCH")
    w1_oik = jnp.transpose(w1, (2, 1, 0))                 # (O, I, K)
    w2_oik = jnp.transpose(w2, (2, 1, 0))
    h = lax.conv_general_dilated(x_bct, w1_oik, (1,), [(1, 1)], dimension_numbers=dn)
    h = jax.nn.relu(h + b1.reshape(1, -1, 1))
    h = lax.conv_general_dilated(h, w2_oik, (1,), [(1, 1)], dimension_numbers=dn)
    h = jax.nn.relu(h + b2.reshape(1, -1, 1))
    p = jnp.mean(h, axis=-1)                              # (B, 128)
    z = jax.nn.relu(p @ fw1 + fb1)
    return z @ fw2 + fb2                                  # (B, 1)


if __name__ == "__main__":
    C_IN, T = 13, 16
    key = jax.random.PRNGKey(0)
    ks = jax.random.split(key, 10)

    def init(k, shape, scale=0.1):
        return (scale * jax.random.normal(k, shape)).astype(jnp.float32)

    params = (
        init(ks[0], (3, C_IN, 64)),    # conv1 weight, stored (K, Cin, Cout)
        init(ks[1], (1, 64)),          # conv1 bias
        init(ks[2], (3, 64, 128)),     # conv2 weight
        init(ks[3], (1, 128)),         # conv2 bias
        init(ks[4], (128, 64)),        # fc1 weight (in, out)
        init(ks[5], (1, 64)),          # fc1 bias
        init(ks[6], (64, 1)),          # fc2 weight (in, out)
        init(ks[7], (1, 1)),           # fc2 bias
    )

    # bf16 matmul operands with f32 accumulation -> relaxed tolerance vs the fp32 reference.
    ATOL = RTOL = 3e-2

    # Check 1: small batch (single block, padded batch).
    x_small = init(ks[8], (2, C_IN, T), scale=1.0)        # PyTorch NCW input
    out = jax.block_until_ready(speech_model(x_small, params))
    ref = reference(x_small, params)
    assert out.shape == (2, 1), out.shape
    assert jnp.allclose(out, ref, atol=ATOL, rtol=RTOL), (out, ref)

    # Check 2: multi-block grid with batch padding (exercises block indexing / parallel grid).
    x_multi = init(ks[9], (20, C_IN, T), scale=1.0)
    out2 = jax.block_until_ready(speech_model(x_multi, params, block_b=8))
    ref2 = reference(x_multi, params)
    assert out2.shape == (20, 1), out2.shape
    assert jnp.allclose(out2, ref2, atol=ATOL, rtol=RTOL), (out2, ref2)

    print("KERNEL_OK")
</pallas_src>

<mosaic_0001>
module attributes {stable_mosaic.version = 11 : i64} {
  func.func @speech_kernel(%arg0: i32, %arg1: memref<16x16x13xbf16, #tpu.memory_space<vmem>>, %arg2: memref<13x384xbf16, #tpu.memory_space<vmem>>, %arg3: memref<1x128xf32, #tpu.memory_space<vmem>>, %arg4: memref<384x128xbf16, #tpu.memory_space<vmem>>, %arg5: memref<1x128xf32, #tpu.memory_space<vmem>>, %arg6: memref<64x128xbf16, #tpu.memory_space<vmem>>, %arg7: memref<64x1xf32, #tpu.memory_space<vmem>>, %arg8: memref<1x64xbf16, #tpu.memory_space<vmem>>, %arg9: memref<1x1xf32, #tpu.memory_space<vmem>>, %arg10: memref<1x1x16xf32, #tpu.memory_space<vmem>>) attributes {dimension_semantics = [#tpu.dimension_semantics<parallel>], iteration_bounds = array<i64: 1>, scalar_prefetch = 0 : i64, scratch_operands = 0 : i64, tpu.core_type = #tpu.core_type<tc>, window_params = [{transform_indices = @transform_0, window_bounds = array<i64: 16, 16, 13>}, {pipeline_mode = #tpu.pipeline_mode<synchronous>, transform_indices = @transform_1, window_bounds = array<i64: 13, 384>}, {pipeline_mode = #tpu.pipeline_mode<synchronous>, transform_indices = @transform_2, window_bounds = array<i64: 1, 128>}, {pipeline_mode = #tpu.pipeline_mode<synchronous>, transform_indices = @transform_3, window_bounds = array<i64: 384, 128>}, {pipeline_mode = #tpu.pipeline_mode<synchronous>, transform_indices = @transform_4, window_bounds = array<i64: 1, 128>}, {pipeline_mode = #tpu.pipeline_mode<synchronous>, transform_indices = @transform_5, window_bounds = array<i64: 64, 128>}, {pipeline_mode = #tpu.pipeline_mode<synchronous>, transform_indices = @transform_6, window_bounds = array<i64: 64, 1>}, {pipeline_mode = #tpu.pipeline_mode<synchronous>, transform_indices = @transform_7, window_bounds = array<i64: 1, 64>}, {pipeline_mode = #tpu.pipeline_mode<synchronous>, transform_indices = @transform_8, window_bounds = array<i64: 1, 1>}, {transform_indices = @transform_9, window_bounds = array<i64: 1, 1, 16>}]} {
    %c0 = arith.constant 0 : index
    %c0_0 = arith.constant 0 : index
    %c0_1 = arith.constant 0 : index
    %0 = vector.load %arg1[%c0, %c0_0, %c0_1] : memref<16x16x13xbf16, #tpu.memory_space<vmem>>, vector<16x16x13xbf16>
    %1 = vector.shape_cast %0 : vector<16x16x13xbf16> to vector<256x13xbf16>
    %c0_2 = arith.constant 0 : index
    %c0_3 = arith.constant 0 : index
    %2 = vector.load %arg2[%c0_2, %c0_3] : memref<13x384xbf16, #tpu.memory_space<vmem>>, vector<13x384xbf16>
    %cst = arith.constant dense<0.000000e+00> : vector<256x384xf32>
    %3 = tpu.matmul %1, %2, %cst {dimension_numbers = #tpu.dot_dimension_numbers<[1], [0], [0], [1], [0, 0, 1, 1], [], []>} : vector<256x13xbf16>, vector<13x384xbf16>, vector<256x384xf32> -> vector<256x384xf32>
    %4 = vector.extract_strided_slice %3 {offsets = [0, 0], sizes = [256, 128], strides = [1, 1]} : vector<256x384xf32> to vector<256x128xf32>
    %5 = vector.extract_strided_slice %3 {offsets = [0, 128], sizes = [256, 128], strides = [1, 1]} : vector<256x384xf32> to vector<256x128xf32>
    %6 = vector.extract_strided_slice %3 {offsets = [0, 256], sizes = [256, 128], strides = [1, 1]} : vector<256x384xf32> to vector<256x128xf32>
    %cst_4 = arith.constant 0.000000e+00 : f32
    %7 = vector.broadcast %cst_4 : f32 to vector<16x128xf32>
    %c0_5 = arith.constant 0 : index
    %c0_6 = arith.constant 0 : index
    %8 = vector.load %arg3[%c0_5, %c0_6] : memref<1x128xf32, #tpu.memory_space<vmem>>, vector<1x128xf32>
    %9 = vector.broadcast %8 : vector<1x128xf32> to vector<256x128xf32>
    %10 = arith.addf %5, %9 : vector<256x128xf32>
    %11 = vector.extract_strided_slice %4 {offsets = [0, 0], sizes = [240, 128], strides = [1, 1]} : vector<256x128xf32> to vector<240x128xf32>
    %12 = tpu.concatenate %7, %11 in 0 : vector<16x128xf32>, vector<240x128xf32> -> vector<256x128xf32>
    %13 = arith.addf %10, %12 : vector<256x128xf32>
    %14 = vector.extract_strided_slice %6 {offsets = [16, 0], sizes = [240, 128], strides = [1, 1]} : vector<256x128xf32> to vector<240x128xf32>
    %15 = tpu.concatenate %14, %7 in 0 : vector<240x128xf32>, vector<16x128xf32> -> vector<256x128xf32>
    %16 = arith.addf %13, %15 : vector<256x128xf32>
    %cst_7 = arith.constant 0.000000e+00 : f32
    %17 = vector.broadcast %cst_7 : f32 to vector<256x128xf32>
    %18 = arith.maximumf %16, %17 : vector<256x128xf32>
    %19 = arith.truncf %18 : vector<256x128xf32> to vector<256x128xbf16>
    %cst_8 = arith.constant 0.000000e+00 : bf16
    %20 = vector.broadcast %cst_8 : bf16 to vector<16x128xbf16>
    %21 = vector.extract_strided_slice %19 {offsets = [0, 0], sizes = [240, 128], strides = [1, 1]} : vector<256x128xbf16> to vector<240x128xbf16>
    %22 = tpu.concatenate %20, %21 in 0 : vector<16x128xbf16>, vector<240x128xbf16> -> vector<256x128xbf16>
    %23 = vector.extract_strided_slice %19 {offsets = [16, 0], sizes = [240, 128], strides = [1, 1]} : vector<256x128xbf16> to vector<240x128xbf16>
    %24 = tpu.concatenate %23, %20 in 0 : vector<240x128xbf16>, vector<16x128xbf16> -> vector<256x128xbf16>
    %25 = tpu.concatenate %22, %19, %24 in 1 : vector<256x128xbf16>, vector<256x128xbf16>, vector<256x128xbf16> -> vector<256x384xbf16>
    %c0_9 = arith.constant 0 : index
    %c0_10 = arith.constant 0 : index
    %26 = vector.load %arg4[%c0_9, %c0_10] : memref<384x128xbf16, #tpu.memory_space<vmem>>, vector<384x128xbf16>
    %cst_11 = arith.constant dense<0.000000e+00> : vector<256x128xf32>
    %27 = tpu.matmul %25, %26, %cst_11 {dimension_numbers = #tpu.dot_dimension_numbers<[1], [0], [0], [1], [0, 0, 1, 1], [], []>} : vector<256x384xbf16>, vector<384x128xbf16>, vector<256x128xf32> -> vector<256x128xf32>
    %c0_12 = arith.constant 0 : index
    %c0_13 = arith.constant 0 : index
    %28 = vector.load %arg5[%c0_12, %c0_13] : memref<1x128xf32, #tpu.memory_space<vmem>>, vector<1x128xf32>
    %29 = vector.broadcast %28 : vector<1x128xf32> to vector<256x128xf32>
    %30 = arith.addf %27, %29 : vector<256x128xf32>
    %cst_14 = arith.constant 0.000000e+00 : f32
    %31 = vector.broadcast %cst_14 : f32 to vector<256x128xf32>
    %32 = arith.maximumf %30, %31 : vector<256x128xf32>
    %33 = vector.shape_cast %32 : vector<256x128xf32> to vector<16x16x128xf32>
    %cst_15 = arith.constant dense<0.000000e+00> : vector<16x128xf32>
    %34 = vector.multi_reduction <add>, %33, %cst_15 [0] : vector<16x16x128xf32> to vector<16x128xf32>
    %35 = arith.truncf %34 : vector<16x128xf32> to vector<16x128xbf16>
    %c0_16 = arith.constant 0 : index
    %c0_17 = arith.constant 0 : index
    %36 = vector.load %arg6[%c0_16, %c0_17] : memref<64x128xbf16, #tpu.memory_space<vmem>>, vector<64x128xbf16>
    %cst_18 = arith.constant dense<0.000000e+00> : vector<64x16xf32>
    %37 = tpu.matmul %36, %35, %cst_18 {dimension_numbers = #tpu.dot_dimension_numbers<[1], [1], [0], [0], [0, 0, 1, 0], [], []>} : vector<64x128xbf16>, vector<16x128xbf16>, vector<64x16xf32> -> vector<64x16xf32>
    %c0_19 = arith.constant 0 : index
    %c0_20 = arith.constant 0 : index
    %38 = vector.load %arg7[%c0_19, %c0_20] : memref<64x1xf32, #tpu.memory_space<vmem>>, vector<64x1xf32>
    %39 = vector.broadcast %38 : vector<64x1xf32> to vector<64x16xf32>
    %40 = arith.addf %37, %39 : vector<64x16xf32>
    %cst_21 = arith.constant 0.000000e+00 : f32
    %41 = vector.broadcast %cst_21 : f32 to vector<64x16xf32>
    %42 = arith.maximumf %40, %41 : vector<64x16xf32>
    %43 = arith.truncf %42 : vector<64x16xf32> to vector<64x16xbf16>
    %c0_22 = arith.constant 0 : index
    %c0_23 = arith.constant 0 : index
    %44 = vector.load %arg8[%c0_22, %c0_23] : memref<1x64xbf16, #tpu.memory_space<vmem>>, vector<1x64xbf16>
    %cst_24 = arith.constant dense<0.000000e+00> : vector<1x16xf32>
    %45 = tpu.matmul %44, %43, %cst_24 {dimension_numbers = #tpu.dot_dimension_numbers<[1], [0], [0], [1], [0, 0, 1, 1], [], []>} : vector<1x64xbf16>, vector<64x16xbf16>, vector<1x16xf32> -> vector<1x16xf32>
    %c0_25 = arith.constant 0 : index
    %c0_26 = arith.constant 0 : index
    %46 = vector.load %arg9[%c0_25, %c0_26] : memref<1x1xf32, #tpu.memory_space<vmem>>, vector<1x1xf32>
    %47 = vector.broadcast %46 : vector<1x1xf32> to vector<1x16xf32>
    %48 = arith.addf %45, %47 : vector<1x16xf32>
    %49 = vector.shape_cast %48 : vector<1x16xf32> to vector<1x1x16xf32>
    %c0_27 = arith.constant 0 : index
    %c0_28 = arith.constant 0 : index
    %c0_29 = arith.constant 0 : index
    %50 = vector.load %arg10[%c0_27, %c0_28, %c0_29] : memref<1x1x16xf32, #tpu.memory_space<vmem>>, vector<1x1x16xf32>
    tpu.vector_store %arg10[%c0_27, %c0_28, %c0_29], %49 {strides = array<i32>} : memref<1x1x16xf32, #tpu.memory_space<vmem>>, vector<1x1x16xf32>,
    return
  }
  func.func @transform_0(%arg0: i32) -> (i32, i32, i32) {
    %c0_i32 = arith.constant 0 : i32
    %c0_i32_0 = arith.constant 0 : i32
    %c0_i32_1 = arith.constant 0 : i32
    return %c0_i32, %arg0, %c0_i32_0 : i32, i32, i32
  }
  func.func @transform_1(%arg0: i32) -> (i32, i32) {
    %c0_i32 = arith.constant 0 : i32
    %c0_i32_0 = arith.constant 0 : i32
    %c0_i32_1 = arith.constant 0 : i32
    return %c0_i32, %c0_i32_0 : i32, i32
  }
  func.func @transform_2(%arg0: i32) -> (i32, i32) {
    %c0_i32 = arith.constant 0 : i32
    %c0_i32_0 = arith.constant 0 : i32
    %c0_i32_1 = arith.constant 0 : i32
    return %c0_i32, %c0_i32_0 : i32, i32
  }
  func.func @transform_3(%arg0: i32) -> (i32, i32) {
    %c0_i32 = arith.constant 0 : i32
    %c0_i32_0 = arith.constant 0 : i32
    %c0_i32_1 = arith.constant 0 : i32
    return %c0_i32, %c0_i32_0 : i32, i32
  }
  func.func @transform_4(%arg0: i32) -> (i32, i32) {
    %c0_i32 = arith.constant 0 : i32
    %c0_i32_0 = arith.constant 0 : i32
    %c0_i32_1 = arith.constant 0 : i32
    return %c0_i32, %c0_i32_0 : i32, i32
  }
  func.func @transform_5(%arg0: i32) -> (i32, i32) {
    %c0_i32 = arith.constant 0 : i32
    %c0_i32_0 = arith.constant 0 : i32
    %c0_i32_1 = arith.constant 0 : i32
    return %c0_i32, %c0_i32_0 : i32, i32
  }
  func.func @transform_6(%arg0: i32) -> (i32, i32) {
    %c0_i32 = arith.constant 0 : i32
    %c0_i32_0 = arith.constant 0 : i32
    %c0_i32_1 = arith.constant 0 : i32
    return %c0_i32, %c0_i32_0 : i32, i32
  }
  func.func @transform_7(%arg0: i32) -> (i32, i32) {
    %c0_i32 = arith.constant 0 : i32
    %c0_i32_0 = arith.constant 0 : i32
    %c0_i32_1 = arith.constant 0 : i32
    return %c0_i32, %c0_i32_0 : i32, i32
  }
  func.func @transform_8(%arg0: i32) -> (i32, i32) {
    %c0_i32 = arith.constant 0 : i32
    %c0_i32_0 = arith.constant 0 : i32
    %c0_i32_1 = arith.constant 0 : i32
    return %c0_i32, %c0_i32_0 : i32, i32
  }
  func.func @transform_9(%arg0: i32) -> (i32, i32, i32) {
    %c0_i32 = arith.constant 0 : i32
    %c0_i32_0 = arith.constant 0 : i32
    %c0_i32_1 = arith.constant 0 : i32
    return %arg0, %c0_i32, %c0_i32_0 : i32, i32, i32
  }
}

</mosaic_0001>

<bundles_post_ra>
// kernel: tpu_custom_call.1
= control target key start
LH: loop header
LB: loop body
LE: loop exit
PB: predicated region body
PF: predicated region fallthrough
CT: control target
= control target key end

     0   :  { %s2386_s0 = inlined_call_operand.vmem [shape: bf16[16,16,13], index: 0, kind: input, shape index: {}]   ;;  %s2387_s1 = inlined_call_operand.vmem [shape: bf16[13,384], index: 1, kind: input, shape index: {}]   ;;  %s2388_s2 = inlined_call_operand.vmem [shape: f32[1,128], index: 2, kind: input, shape index: {}]   ;;  %s2389_s3 = inlined_call_operand.vmem [shape: bf16[384,128], index: 3, kind: input, shape index: {}]   ;;  %s2390_s4 = inlined_call_operand.vmem [shape: f32[1,128], index: 4, kind: input, shape index: {}]   ;;  %s2391_s5 = inlined_call_operand.vmem [shape: bf16[64,128], index: 5, kind: input, shape index: {}]   ;;  %s2392_s6 = inlined_call_operand.vmem [shape: f32[64,1], index: 6, kind: input, shape index: {}]   ;;  %s2393_s7 = inlined_call_operand.vmem [shape: bf16[1,64], index: 7, kind: input, shape index: {}]   ;;  %s2394_s8 = inlined_call_operand.<no memory space> [shape: f32[1,1], index: 8, kind: input, shape index: {}]   ;;  %s2395_s9 = inlined_call_operand.hbm [shape: f32[1,1,16], index: 9, kind: output, shape index: {}]  }
   0x1   :  { %v14_v0 = vstv %s2394_s8 }
   0x2   :  { %15 = vst [vmem:[#allocation2] sm:$0x1] %v14_v0 }
   0x3   :  { %v1896_v1 = vld [vmem:[%s2387_s1 + $0x4] ss:$12 sps:$4 sm:$0x7f]   ;;  %vm214_vm0 = vcmask 1045504   ;;  %vm215_vm1 = vcmask 1046528   ;;  %v1968_v3 = vmov 65535  }
   0x4   :  { %v1898_v2 = vld [vmem:[%s2387_s1] ss:$12 sps:$4 sm:$0x7f]   ;;  %v216_v4 = vsel %vm214_vm0, 4294967295, %v1968_v3  ;;  %v1969_v7 = vmov 0   ;;  %vm165_vm2 = vcmask 105472  }
   0x5   :  { %v217_v5 = vsel %vm215_vm1, %v216_v4, 0  ;;  %v1899_v6 = vld [vmem:[%s2387_s1 + $0x8] ss:$12 sps:$4 sm:$0x7f]   ;;  %259 = vmatprep.mubr.bf16.mxu0 %v1969_v7  ;;  %1894 = vset.pattern.permute.xlu0 %v1969_v7  ;;  %v1900_v10 = vld [vmem:[%s2386_s0] sm:$0xff]   ;;  %v1903_v14 = vld [vmem:[%s2386_s0 + $0x18] sm:$0xff]  }
   0x6   :  { %v222_v8 = vand.u32 %v1896_v1, %v217_v5  ;;  %v219_v9 = vand.u32 %v1898_v2, %v217_v5  ;;  %1895 = vset.pattern.permute.xlu1 %v1969_v7  ;;  %v225_v11 = vand.u32 %v1899_v6, %v217_v5  ;;  %1787 = vmatprep.mubr.msk.bf16.mxu1 %vm165_vm2, %v1900_v10  ;;  %v1901_v12 = vld [vmem:[%s2386_s0 + $0x8] sm:$0xff]   ;;  %v1902_v13 = vld [vmem:[%s2386_s0 + $0x10] sm:$0xff]   ;;  %v1904_v15 = vld [vmem:[%s2386_s0 + $0x20] sm:$0xff]  }
   0x7   :  { %v1916_v16 = vld [vmem:[%s2389_s3 + $0x40] sm:$0xff]   ;;  %v1905_v17 = vld [vmem:[%s2386_s0 + $0x28] sm:$0xff]   ;;  %v1906_v20 = vld [vmem:[%s2386_s0 + $0x30] sm:$0xff]  }
   0x8   :  { %227 = vmatprep.subr.bf16.mxu0 %v222_v8  ;;  %1785 = vmatprep.subr.bf16.mxu1 %v225_v11  ;;  %v1917_v18 = vld [vmem:[%s2389_s3] sm:$0xff]   ;;  %v1918_v19 = vld [vmem:[%s2389_s3 + $0x48] sm:$0xff]   ;;  %v1920_v22 = vld [vmem:[%s2389_s3 + $0x50] sm:$0xff]  }
   0x9   :  { %228 = vmatpush1.bf16.msra.mxu0 %v219_v9  ;;  %1786 = vmatpush3.bf16.msra.mxu1 %v225_v11  ;;  %v1919_v21 = vld [vmem:[%s2389_s3 + $0x8] sm:$0xff]   ;;  %v1921_v23 = vld [vmem:[%s2389_s3 + $0x10] sm:$0xff]   ;;  %v1907_v24 = vld [vmem:[%s2386_s0 + $0x38] sm:$0xff]  }
   0xa   :  { %1639 = vmatprep.subr.bf16.mxu1 %v1916_v16  ;;  %v1922_v25 = vld [vmem:[%s2389_s3 + $0x58] sm:$0xff]   ;;  %v1908_v26 = vld [vmem:[%s2386_s0 + $0x40] sm:$0xff]   ;;  %v1909_v31 = vld [vmem:[%s2386_s0 + $0x48] sm:$0xff]  }
   0xb   :  { %v1923_v27 = vld [vmem:[%s2389_s3 + $0x18] sm:$0xff]   ;;  %v1926_v28 = vld [vmem:[%s2389_s3 + $0x80] sm:$0xff]   ;;  %v1910_v32 = vld [vmem:[%s2386_s0 + $0x50] sm:$0xff]  }
   0xc   :  { %1559 = vmatmul.mubr.msk.bf16.vlgmr.msra.gmra.mrb[0].mxu0 %vm165_vm2, %v1900_v10  ;;  %1788 = vmatmul.mubr.msk.bf16.vlgmr.msra.gmra.mrb[0].mxu1 %vm165_vm2, %v1901_v12  ;;  %v1924_v29 = vld [vmem:[%s2389_s3 + $0x60] sm:$0xff]  }
   0xd   :  { %269 = vmatprep.mubr.bf16.mxu0 %v1969_v7  ;;  %1791 = vmatprep.mubr.msk.bf16.mxu1 %vm165_vm2, %v1902_v13  ;;  %v1925_v30 = vld [vmem:[%s2389_s3 + $0x20] sm:$0xff]  }
   0xe   :  { %1640 = vmatpush3.bf16.msra.mxu1 %v1917_v18  ;;  %1819 = vmatprep.subr.bf16.mxu0 %v1926_v28 }
   0xf   :  { %1641 = vmatprep.subr.bf16.mxu1 %v1918_v19  ;;  %1820 = vmatpush3.bf16.msra.mxu0 %v1926_v28 }
  0x12   :  { %1642 = vmatpush3.bf16.msra.mxu1 %v1919_v21 }
  0x13   :  { %1643 = vmatprep.subr.bf16.mxu1 %v1920_v22 }
  0x14   :  { %1560 = vmatmul.mubr.msk.bf16.gmra.mrb[4].mxu0 %vm165_vm2, %v1901_v12  ;;  %1792 = vmatmul.mubr.msk.bf16.gmra.mrb[4].mxu1 %vm165_vm2, %v1903_v14 }
  0x15   :  { %279 = vmatprep.mubr.bf16.mxu0 %v1969_v7  ;;  %1795 = vmatprep.mubr.msk.bf16.mxu1 %vm165_vm2, %v1904_v15 }
  0x16   :  { %1644 = vmatpush3.bf16.msra.mxu1 %v1921_v23 }
  0x17   :  { %1645 = vmatprep.subr.bf16.mxu1 %v1922_v25 }
  0x1a   :  { %1646 = vmatpush3.bf16.msra.mxu1 %v1923_v27 }
  0x1b   :  { %1647 = vmatprep.subr.bf16.mxu1 %v1924_v29 }
  0x1c   :  { %1561 = vmatmul.mubr.msk.bf16.gmra.mrb[8].mxu0 %vm165_vm2, %v1902_v13  ;;  %1796 = vmatmul.mubr.msk.bf16.gmra.mrb[8].mxu1 %vm165_vm2, %v1905_v17 }
  0x1d   :  { %289 = vmatprep.mubr.bf16.mxu0 %v1969_v7  ;;  %1799 = vmatprep.mubr.msk.bf16.mxu1 %vm165_vm2, %v1906_v20 }
  0x1e   :  { %1648 = vmatpush3.bf16.msra.mxu1 %v1925_v30 }
  0x24   :  { %1562 = vmatmul.mubr.msk.bf16.gmra.mrb[12].mxu0 %vm165_vm2, %v1903_v14  ;;  %1800 = vmatmul.mubr.msk.bf16.gmra.mrb[12].mxu1 %vm165_vm2, %v1907_v24 }
  0x25   :  { %299 = vmatprep.mubr.bf16.mxu0 %v1969_v7  ;;  %1803 = vmatprep.mubr.msk.bf16.mxu1 %vm165_vm2, %v1908_v26 }
  0x2c   :  { %1563 = vmatmul.mubr.msk.bf16.gmra.mrb[16].mxu0 %vm165_vm2, %v1904_v15 }
  0x2d   :  { %16 = vsyncpa [#allocation4], 0  ;;  %309 = vmatprep.mubr.bf16.mxu0 %v1969_v7  ;;  %1804 = vmatmul.mubr.msk.bf16.gmra.mrb[16].mxu1 %vm165_vm2, %v1909_v31  ;;  %v1911_v33 = vld [vmem:[%s2386_s0 + $0x58] sm:$0xff]   ;;  %v1912_v34 = vld [vmem:[%s2386_s0 + $0x60] sm:$0xff]   ;;  %vm1971_vm3 = vmmov 0   ;;  %vm1480_vm4 = vcmask 523264  }
  0x2e   :  { %1807 = vmatprep.mubr.msk.bf16.mxu1 %vm165_vm2, %v1910_v32  ;;  %v1913_v35 = vld [vmem:[%s2386_s0 + $0x68] sm:$0xff]   ;;  %v1914_v36 = vld [vmem:[%s2386_s0 + $0x70] sm:$0xff]   ;;  %v1915_v37 = vld [vmem:[%s2386_s0 + $0x78] sm:$0xff]   ;;  %s1972_s25 = smov [#allocation3]   ;;  %vm1524_vm5 = vcmask 122880  }
  0x2f   :  { %v1927_v38 = vld [vmem:[%s2389_s3 + $0x68] sm:$0xff]   ;;  %v1930_v41 = vld [vmem:[%s2389_s3 + $0x70] sm:$0xff]   ;;  %v1933_v44 = vld [vmem:[%s2389_s3 + $0x78] sm:$0xff]  }
  0x30   :  { %v1928_v39 = vld [vmem:[%s2389_s3 + $0x28] sm:$0xff]   ;;  %1649 = vmatprep.subr.bf16.mxu1 %v1927_v38  ;;  %v1931_v42 = vld [vmem:[%s2389_s3 + $0x30] sm:$0xff]   ;;  %v1934_v45 = vld [vmem:[%s2389_s3 + $0x38] sm:$0xff]  }
  0x31   :  { %v1929_v40 = vld [vmem:[%s2389_s3 + $0x88] sm:$0xff]   ;;  %1650 = vmatpush3.bf16.msra.mxu1 %v1928_v39  ;;  %v1932_v43 = vld [vmem:[%s2389_s3 + $0x90] sm:$0xff]   ;;  %v1935_v46 = vld [vmem:[%s2389_s3 + $0x98] sm:$0xff]  }
  0x32   :  { %1821 = vmatprep.subr.bf16.mxu0 %v1929_v40  ;;  %1651 = vmatprep.subr.bf16.mxu1 %v1930_v41  ;;  %v1936_v47 = vld [vmem:[%s2389_s3 + $0xa0] sm:$0xff]   ;;  %v1937_v48 = vld [vmem:[%s2389_s3 + $0xa8] sm:$0xff]   ;;  %v1938_v49 = vld [vmem:[%s2389_s3 + $0xb0] sm:$0xff]  }
  0x33   :  { %1822 = vmatpush3.bf16.msra.mxu0 %v1929_v40  ;;  %v1939_v50 = vld [vmem:[%s2389_s3 + $0xb8] sm:$0xff]   ;;  %v2208_v51 = vld [vmem:[%s2388_s2] ss:$0 sm:$0xff]  ;;  %s1532_s2 = sshll.u32 %s1972_s25, 4  ;;  %s1533_s2 = int_to_ptr.vmem [resolvable:$true] %s1532_s2 }
  0x34   :  { %1564 = vmatmul.mubr.msk.bf16.gmra.mrb[20].mxu0 %vm165_vm2, %v1905_v17  ;;  %1823 = vmatprep.subr.bf16.mxu0 %v1932_v43  ;;  %s1944_s3 = scalar_lea.vmem %s1533_s2, 16  ;;  %p1949_p1 = scmp.lt.s32.totalorder %s1533_s2, %s1533_s2 }
  0x35   :  { %319 = vmatprep.mubr.bf16.mxu0 %v1969_v7  ;;  %1808 = vmatmul.mubr.msk.bf16.gmra.mrb[20].mxu1 %vm165_vm2, %v1911_v33  ;;  %p1945_p0 = scmp.ne.s32.totalorder %s1533_s2, %s1944_s3 }
  0x36   :  { %1811 = vmatprep.mubr.msk.bf16.mxu1 %vm165_vm2, %v1912_v34  ;;  %1652 = vmatpush3.bf16.msra.mxu1 %v1931_v42 }
  0x37   :  { %1824 = vmatpush3.bf16.msra.mxu0 %v1932_v43  ;;  %1653 = vmatprep.subr.bf16.mxu1 %v1933_v44 }
  0x38   :  { %1825 = vmatprep.subr.bf16.mxu0 %v1935_v46 }
  0x3a   :  { %1654 = vmatpush3.bf16.msra.mxu1 %v1934_v45 }
  0x3b   :  { %1826 = vmatpush3.bf16.msra.mxu0 %v1935_v46 }
  0x3c   :  { %1565 = vmatmul.mubr.msk.bf16.gmra.mrb[24].mxu0 %vm165_vm2, %v1906_v20  ;;  %1827 = vmatprep.subr.bf16.mxu0 %v1936_v47 }
  0x3d   :  { %329 = vmatprep.mubr.bf16.mxu0 %v1969_v7  ;;  %1812 = vmatmul.mubr.msk.bf16.gmra.mrb[24].mxu1 %vm165_vm2, %v1913_v35 }
  0x3e   :  { %1815 = vmatprep.mubr.msk.bf16.mxu1 %vm165_vm2, %v1914_v36 }
  0x3f   :  { %1828 = vmatpush3.bf16.msra.mxu0 %v1936_v47 }
  0x40   :  { %1829 = vmatprep.subr.bf16.mxu0 %v1937_v48 }
  0x43   :  { %1830 = vmatpush3.bf16.msra.mxu0 %v1937_v48 }
  0x44   :  { %1566 = vmatmul.mubr.msk.bf16.gmra.mrb[28].mxu0 %vm165_vm2, %v1907_v24  ;;  %1831 = vmatprep.subr.bf16.mxu0 %v1938_v49 }
  0x45   :  { %339 = vmatprep.mubr.bf16.mxu0 %v1969_v7  ;;  %1816 = vmatmul.mubr.msk.bf16.gmra.mrb[28].mxu1 %vm165_vm2, %v1915_v37 }
  0x47   :  { %1832 = vmatpush3.bf16.msra.mxu0 %v1938_v49 }
  0x48   :  { %1833 = vmatprep.subr.bf16.mxu0 %v1939_v50 }
  0x4b   :  { %1834 = vmatpush3.bf16.msra.mxu0 %v1939_v50 }
  0x4c   :  { %1567 = vmatmul.mubr.msk.bf16.gmra.mrb[32].mxu0 %vm165_vm2, %v1908_v26 }
  0x4d   :  { %349 = vmatprep.mubr.bf16.mxu0 %v1969_v7 }
  0x54   :  { %1568 = vmatmul.mubr.msk.bf16.gmra.mrb[36].mxu0 %vm165_vm2, %v1909_v31 }
  0x55   :  { %359 = vmatprep.mubr.bf16.mxu0 %v1969_v7 }
  0x5c   :  { %1569 = vmatmul.mubr.msk.bf16.gmra.mrb[40].mxu0 %vm165_vm2, %v1910_v32 }
  0x5d   :  { %369 = vmatprep.mubr.bf16.mxu0 %v1969_v7 }
  0x64   :  { %1570 = vmatmul.mubr.msk.bf16.gmra.mrb[44].mxu0 %vm165_vm2, %v1911_v33 }
  0x65   :  { %379 = vmatprep.mubr.bf16.mxu0 %v1969_v7 }
  0x6c   :  { %1571 = vmatmul.mubr.msk.bf16.gmra.mrb[48].mxu0 %vm165_vm2, %v1912_v34 }
  0x6d   :  { %389 = vmatprep.mubr.bf16.mxu0 %v1969_v7 }
  0x74   :  { %1572 = vmatmul.mubr.msk.bf16.gmra.mrb[52].mxu0 %vm165_vm2, %v1913_v35 }
  0x75   :  { %399 = vmatprep.mubr.bf16.mxu0 %v1969_v7 }
  0x7c   :  { %1573 = vmatmul.mubr.msk.bf16.gmra.mrb[56].mxu0 %vm165_vm2, %v1914_v36 }
  0x7d   :  { %409 = vmatprep.mubr.bf16.mxu0 %v1969_v7 }
  0x84   :  { %1574 = vmatmul.mubr.msk.bf16.gmra.mrb[60].mxu0 %vm165_vm2, %v1915_v37 }
  0xdf   :  { %v261_v52 = vpop.f32.mrb[0].mxu0  ;;  %v1789_v54 = vpop.f32.mrb[0].mxu1 }
  0xe0   :  { %v263_v53 = vpop.f32.mrb[1].mxu0  ;;  %v452_v57 = vpop.f32.mrb[1].mxu1 }
  0xe1   :  { %v584_v55 = vadd.f32 %v2208_v51, %v263_v53  ;;  %v265_v56 = vpop.f32.mrb[2].mxu0  ;;  %v1790_v59 = vpop.f32.mrb[2].mxu1 }
  0xe2   :  { %v267_v58 = vpop.f32.mrb[3].mxu0  ;;  %v454_v62 = vpop.f32.mrb[3].mxu1 }
  0xe3   :  { %v648_v60 = vadd.f32 %v1789_v54, %v584_v55  ;;  %v585_v61 = vadd.f32 %v2208_v51, %v267_v58 }
  0xe5   :  { %v649_v63 = vadd.f32 %v1790_v59, %v585_v61  ;;  %v680_v0 = vmax.f32 %v648_v60, 0.0 }
  0xe7   :  { %v681_v1 = vmax.f32 %v649_v63, 0.0  ;;  %v271_v2 = vpop.f32.mrb[4].mxu0  ;;  %v1793_v4 = vpop.f32.mrb[4].mxu1 }
  0xe8   :  { %v273_v3 = vpop.f32.mrb[5].mxu0  ;;  %v466_v9 = vpop.f32.mrb[5].mxu1 }
  0xe9   :  { %v712_v5 = vpack.c.bf16 %v681_v1, %v680_v0  ;;  %v586_v6 = vadd.f32 %v2208_v51, %v273_v3  ;;  %v275_v8 = vpop.f32.mrb[6].mxu0  ;;  %v1794_v11 = vpop.f32.mrb[6].mxu1 }
  0xea   :  { %v277_v10 = vpop.f32.mrb[7].mxu0  ;;  %v469_v14 = vpop.f32.mrb[7].mxu1 }
  0xeb   :  { %v618_v12 = vadd.f32 %v586_v6, %v261_v52  ;;  %v587_v13 = vadd.f32 %v2208_v51, %v277_v10  ;;  %959 = vmatprep.mubr.bf16.mxu1 %v712_v5 }
  0xec   :  { %960 = vmatmul.mubr.bf16.vlgmr.msra.gmra.mrb[32].mxu1 %v1969_v7 }
  0xed   :  { %v650_v15 = vadd.f32 %v618_v12, %v466_v9  ;;  %v619_v16 = vadd.f32 %v587_v13, %v265_v56 }
  0xef   :  { %v651_v17 = vadd.f32 %v619_v16, %v469_v14  ;;  %v281_v18 = vpop.f32.mrb[8].mxu0  ;;  %v1797_v20 = vpop.f32.mrb[8].mxu1  ;;  %v682_v21 = vmax.f32 %v650_v15, 0.0 }
  0xf0   :  { %v283_v19 = vpop.f32.mrb[9].mxu0  ;;  %v482_v25 = vpop.f32.mrb[9].mxu1 }
  0xf1   :  { %v683_v22 = vmax.f32 %v651_v17, 0.0  ;;  %v588_v23 = vadd.f32 %v2208_v51, %v283_v19  ;;  %v285_v24 = vpop.f32.mrb[10].mxu0  ;;  %v1798_v27 = vpop.f32.mrb[10].mxu1 }
  0xf2   :  { %v287_v26 = vpop.f32.mrb[11].mxu0  ;;  %v485_v31 = vpop.f32.mrb[11].mxu1 }
  0xf3   :  { %v713_v28 = vpack.c.bf16 %v683_v22, %v682_v21  ;;  %v620_v29 = vadd.f32 %v588_v23, %v271_v2  ;;  %v589_v30 = vadd.f32 %v2208_v51, %v287_v26 }
  0xf5   :  { %v652_v32 = vadd.f32 %v1793_v4, %v620_v29  ;;  %v621_v33 = vadd.f32 %v589_v30, %v275_v8  ;;  %967 = vmatprep.mubr.bf16.mxu1 %v713_v28  ;;  %1835 = vmatprep.mubr.bf16.mxu0 %v713_v28 }
  0xf6   :  { %968 = vmatmul.mubr.bf16.gmra.mrb[36].mxu1 %v712_v5 }
  0xf7   :  { %v653_v34 = vadd.f32 %v1794_v11, %v621_v33  ;;  %v291_v35 = vpop.f32.mrb[12].mxu0  ;;  %v2217_v37 = vpop.f32.mrb[12].mxu1  ;;  %v684_v38 = vmax.f32 %v652_v32, 0.0 }
  0xf8   :  { %v293_v36 = vpop.f32.mrb[13].mxu0  ;;  %v498_v42 = vpop.f32.mrb[13].mxu1 }
  0xf9   :  { %v685_v39 = vmax.f32 %v653_v34, 0.0  ;;  %v590_v40 = vadd.f32 %v2208_v51, %v293_v36  ;;  %v295_v41 = vpop.f32.mrb[14].mxu0  ;;  %v2220_v44 = vpop.f32.mrb[14].mxu1 }
  0xfa   :  { %v297_v43 = vpop.f32.mrb[15].mxu0  ;;  %v501_v48 = vpop.f32.mrb[15].mxu1 }
  0xfb   :  { %v622_v45 = vadd.f32 %v590_v40, %v281_v18  ;;  %v591_v46 = vadd.f32 %v2208_v51, %v297_v43  ;;  %v714_v47 = vpack.c.bf16 %v685_v39, %v684_v38 }
  0xfd   :  { %v654_v49 = vadd.f32 %v622_v45, %v482_v25  ;;  %v623_v50 = vadd.f32 %v591_v46, %v285_v24  ;;  %975 = vmatprep.mubr.bf16.mxu1 %v714_v47  ;;  %1836 = vmatmul.mubr.bf16.vlgmr.msra.gmra.mrb[64].mxu0 %v714_v47 }
  0xfe   :  { %976 = vmatmul.mubr.bf16.gmra.mrb[40].mxu1 %v713_v28 }
  0xff   :  { %v655_v52 = vadd.f32 %v623_v50, %v485_v31  ;;  %v301_v53 = vpop.f32.mrb[16].mxu0  ;;  %v686_v56 = vmax.f32 %v654_v49, 0.0 }
 0x100   :  { %v303_v54 = vpop.f32.mrb[17].mxu0  ;;  %v2223_v55 = vpop.f32.mrb[16].mxu1 }
 0x101   :  { %v687_v57 = vmax.f32 %v655_v52, 0.0  ;;  %v592_v58 = vadd.f32 %v2208_v51, %v303_v54  ;;  %v305_v59 = vpop.f32.mrb[18].mxu0  ;;  %v2226_v60 = vpop.f32.mrb[17].mxu1 }
 0x102   :  { %v307_v61 = vpop.f32.mrb[19].mxu0  ;;  %v2228_v62 = vpop.f32.mrb[18].mxu1 }
 0x103   :  { %v715_v63 = vpack.c.bf16 %v687_v57, %v686_v56  ;;  %v624_v0 = vadd.f32 %v592_v58, %v291_v35  ;;  %v593_v1 = vadd.f32 %v2208_v51, %v307_v61  ;;  %v2231_v2 = vpop.f32.mrb[19].mxu1 }
 0x105   :  { %v656_v3 = vadd.f32 %v1797_v20, %v624_v0  ;;  %v625_v4 = vadd.f32 %v593_v1, %v295_v41  ;;  %983 = vmatprep.mubr.bf16.mxu1 %v715_v63  ;;  %1839 = vmatprep.mubr.bf16.mxu0 %v715_v63 }
 0x106   :  { %984 = vmatmul.mubr.bf16.gmra.mrb[44].mxu1 %v714_v47 }
 0x107   :  { %v657_v5 = vadd.f32 %v1798_v27, %v625_v4  ;;  %v311_v6 = vpop.f32.mrb[20].mxu0  ;;  %v688_v10 = vmax.f32 %v656_v3, 0.0 }
 0x108   :  { %v313_v8 = vpop.f32.mrb[21].mxu0  ;;  %v2233_v9 = vpop.f32.mrb[20].mxu1 }
 0x109   :  { %v689_v11 = vmax.f32 %v657_v5, 0.0  ;;  %v594_v12 = vadd.f32 %v2208_v51, %v313_v8  ;;  %v315_v13 = vpop.f32.mrb[22].mxu0  ;;  %v2236_v14 = vpop.f32.mrb[21].mxu1 }
 0x10a   :  { %v317_v15 = vpop.f32.mrb[23].mxu0  ;;  %v2238_v16 = vpop.f32.mrb[22].mxu1 }
 0x10b   :  { %v626_v17 = vadd.f32 %v594_v12, %v301_v53  ;;  %v595_v18 = vadd.f32 %v2208_v51, %v317_v15  ;;  %v716_v19 = vpack.c.bf16 %v689_v11, %v688_v10  ;;  %v2241_v20 = vpop.f32.mrb[23].mxu1 }
 0x10d   :  { %v658_v21 = vadd.f32 %v626_v17, %v498_v42  ;;  %v627_v22 = vadd.f32 %v595_v18, %v305_v59  ;;  %991 = vmatprep.mubr.bf16.mxu1 %v716_v19  ;;  %1840 = vmatmul.mubr.bf16.gmra.mrb[68].mxu0 %v716_v19 }
 0x10e   :  { %992 = vmatmul.mubr.bf16.gmra.mrb[48].mxu1 %v715_v63 }
 0x10f   :  { %v659_v23 = vadd.f32 %v627_v22, %v501_v48  ;;  %v321_v24 = vpop.f32.mrb[24].mxu0  ;;  %v690_v27 = vmax.f32 %v658_v21, 0.0 }
 0x110   :  { %v323_v25 = vpop.f32.mrb[25].mxu0  ;;  %v2243_v26 = vpop.f32.mrb[24].mxu1 }
 0x111   :  { %v691_v28 = vmax.f32 %v659_v23, 0.0  ;;  %v596_v29 = vadd.f32 %v2208_v51, %v323_v25  ;;  %v325_v30 = vpop.f32.mrb[26].mxu0  ;;  %v2246_v31 = vpop.f32.mrb[25].mxu1 }
 0x112   :  { %v327_v32 = vpop.f32.mrb[27].mxu0  ;;  %v2248_v33 = vpop.f32.mrb[26].mxu1 }
 0x113   :  { %v717_v34 = vpack.c.bf16 %v691_v28, %v690_v27  ;;  %v628_v35 = vadd.f32 %v596_v29, %v311_v6  ;;  %v597_v36 = vadd.f32 %v2208_v51, %v327_v32  ;;  %v2251_v38 = vpop.f32.mrb[27].mxu1 }
 0x115   :  { %v660_v39 = vadd.f32 %v2217_v37, %v628_v35  ;;  %v629_v40 = vadd.f32 %v597_v36, %v315_v13  ;;  %999 = vmatprep.mubr.bf16.mxu1 %v717_v34  ;;  %1843 = vmatprep.mubr.bf16.mxu0 %v717_v34 }
 0x116   :  { %1000 = vmatmul.mubr.bf16.gmra.mrb[52].mxu1 %v716_v19 }
 0x117   :  { %v661_v41 = vadd.f32 %v2220_v44, %v629_v40  ;;  %v331_v42 = vpop.f32.mrb[28].mxu0  ;;  %v692_v46 = vmax.f32 %v660_v39, 0.0 }
 0x118   :  { %v333_v43 = vpop.f32.mrb[29].mxu0  ;;  %v2255_v45 = vpop.f32.mrb[28].mxu1 }
 0x119   :  { %v693_v47 = vmax.f32 %v661_v41, 0.0  ;;  %v598_v48 = vadd.f32 %v2208_v51, %v333_v43  ;;  %v335_v49 = vpop.f32.mrb[30].mxu0  ;;  %v2258_v50 = vpop.f32.mrb[29].mxu1 }
 0x11a   :  { %v337_v52 = vpop.f32.mrb[31].mxu0  ;;  %v2260_v53 = vpop.f32.mrb[30].mxu1 }
 0x11b   :  { %v630_v37 = vadd.f32 %v598_v48, %v321_v24  ;;  %v599_v54 = vadd.f32 %v2208_v51, %v337_v52  ;;  %v718_v56 = vpack.c.bf16 %v693_v47, %v692_v46  ;;  %v2263_v57 = vpop.f32.mrb[31].mxu1 }
 0x11d   :  { %v662_v44 = vadd.f32 %v630_v37, %v2226_v60  ;;  %v631_v58 = vadd.f32 %v599_v54, %v325_v30  ;;  %1007 = vmatprep.mubr.bf16.mxu1 %v718_v56  ;;  %1844 = vmatmul.mubr.bf16.gmra.mrb[72].mxu0 %v718_v56 }
 0x11e   :  { %1008 = vmatmul.mubr.bf16.gmra.mrb[56].mxu1 %v717_v34 }
 0x11f   :  { %v663_v59 = vadd.f32 %v631_v58, %v2231_v2  ;;  %v341_v61 = vpop.f32.mrb[32].mxu0  ;;  %v694_v0 = vmax.f32 %v662_v44, 0.0 }
 0x120   :  { %v343_v63 = vpop.f32.mrb[33].mxu0 }
 0x121   :  { %v695_v1 = vmax.f32 %v663_v59, 0.0  ;;  %v600_v3 = vadd.f32 %v2208_v51, %v343_v63  ;;  %v345_v4 = vpop.f32.mrb[34].mxu0 }
 0x122   :  { %v347_v5 = vpop.f32.mrb[35].mxu0 }
 0x123   :  { %v719_v6 = vpack.c.bf16 %v695_v1, %v694_v0  ;;  %v632_v8 = vadd.f32 %v600_v3, %v331_v42  ;;  %v601_v10 = vadd.f32 %v2208_v51, %v347_v5 }
 0x125   :  { %v664_v60 = vadd.f32 %v2223_v55, %v632_v8  ;;  %v633_v11 = vadd.f32 %v601_v10, %v335_v49  ;;  %1015 = vmatprep.mubr.bf16.mxu1 %v719_v6  ;;  %1847 = vmatprep.mubr.bf16.mxu0 %v719_v6 }
 0x126   :  { %1016 = vmatmul.mubr.bf16.gmra.mrb[60].mxu1 %v718_v56 }
 0x127   :  { %v665_v2 = vadd.f32 %v2228_v62, %v633_v11  ;;  %v351_v12 = vpop.f32.mrb[36].mxu0  ;;  %v696_v15 = vmax.f32 %v664_v60, 0.0 }
 0x128   :  { %v353_v13 = vpop.f32.mrb[37].mxu0 }
 0x129   :  { %v697_v17 = vmax.f32 %v665_v2, 0.0  ;;  %v602_v18 = vadd.f32 %v2208_v51, %v353_v13  ;;  %v355_v19 = vpop.f32.mrb[38].mxu0 }
 0x12a   :  { %v357_v21 = vpop.f32.mrb[39].mxu0 }
 0x12b   :  { %v634_v22 = vadd.f32 %v602_v18, %v341_v61  ;;  %v603_v23 = vadd.f32 %v2208_v51, %v357_v21  ;;  %v720_v24 = vpack.c.bf16 %v697_v17, %v696_v15 }
 0x12d   :  { %v666_v55 = vadd.f32 %v634_v22, %v2236_v14  ;;  %v635_v25 = vadd.f32 %v603_v23, %v345_v4  ;;  %1023 = vmatprep.mubr.bf16.mxu1 %v720_v24  ;;  %1848 = vmatmul.mubr.bf16.gmra.mrb[76].mxu0 %v720_v24 }
 0x12e   :  { %1024 = vmatmul.mubr.bf16.gmra.mrb[64].mxu1 %v719_v6 }
 0x12f   :  { %v667_v62 = vadd.f32 %v635_v25, %v2241_v20  ;;  %v361_v27 = vpop.f32.mrb[40].mxu0  ;;  %v698_v29 = vmax.f32 %v666_v55, 0.0 }
 0x130   :  { %v363_v28 = vpop.f32.mrb[41].mxu0 }
 0x131   :  { %v699_v30 = vmax.f32 %v667_v62, 0.0  ;;  %v604_v32 = vadd.f32 %v2208_v51, %v363_v28  ;;  %v365_v34 = vpop.f32.mrb[42].mxu0 }
 0x132   :  { %v367_v35 = vpop.f32.mrb[43].mxu0 }
 0x133   :  { %v721_v36 = vpack.c.bf16 %v699_v30, %v698_v29  ;;  %v636_v39 = vadd.f32 %v604_v32, %v351_v12  ;;  %v605_v40 = vadd.f32 %v2208_v51, %v367_v35 }
 0x135   :  { %v668_v14 = vadd.f32 %v2233_v9, %v636_v39  ;;  %v637_v41 = vadd.f32 %v605_v40, %v355_v19  ;;  %1031 = vmatprep.mubr.bf16.mxu1 %v721_v36  ;;  %1851 = vmatprep.mubr.bf16.mxu0 %v721_v36 }
 0x136   :  { %1032 = vmatmul.mubr.bf16.gmra.mrb[68].mxu1 %v720_v24 }
 0x137   :  { %v669_v20 = vadd.f32 %v2238_v16, %v637_v41  ;;  %v371_v42 = vpop.f32.mrb[44].mxu0  ;;  %v700_v46 = vmax.f32 %v668_v14, 0.0 }
 0x138   :  { %v373_v43 = vpop.f32.mrb[45].mxu0 }
 0x139   :  { %v701_v47 = vmax.f32 %v669_v20, 0.0  ;;  %v606_v48 = vadd.f32 %v2208_v51, %v373_v43  ;;  %v375_v49 = vpop.f32.mrb[46].mxu0 }
 0x13a   :  { %v377_v52 = vpop.f32.mrb[47].mxu0 }
 0x13b   :  { %v638_v37 = vadd.f32 %v606_v48, %v361_v27  ;;  %v607_v54 = vadd.f32 %v2208_v51, %v377_v52  ;;  %v722_v56 = vpack.c.bf16 %v701_v47, %v700_v46 }
 0x13d   :  { %v670_v9 = vadd.f32 %v638_v37, %v2246_v31  ;;  %v639_v44 = vadd.f32 %v607_v54, %v365_v34  ;;  %1039 = vmatprep.mubr.bf16.mxu1 %v722_v56  ;;  %1852 = vmatmul.mubr.bf16.gmra.mrb[80].mxu0 %v722_v56 }
 0x13e   :  { %1040 = vmatmul.mubr.bf16.gmra.mrb[72].mxu1 %v721_v36 }
 0x13f   :  { %v671_v16 = vadd.f32 %v639_v44, %v2251_v38  ;;  %v381_v58 = vpop.f32.mrb[48].mxu0  ;;  %v702_v61 = vmax.f32 %v670_v9, 0.0  ;;  %v1940_v44 = vld [vmem:[%s2391_s5] sm:$0xff]  }
 0x140   :  { %v383_v59 = vpop.f32.mrb[49].mxu0 }
 0x141   :  { %v703_v63 = vmax.f32 %v671_v16, 0.0  ;;  %v608_v0 = vadd.f32 %v2208_v51, %v383_v59  ;;  %v385_v1 = vpop.f32.mrb[50].mxu0 }
 0x142   :  { %v387_v3 = vpop.f32.mrb[51].mxu0 }
 0x143   :  { %v723_v4 = vpack.c.bf16 %v703_v63, %v702_v61  ;;  %v640_v5 = vadd.f32 %v608_v0, %v371_v42  ;;  %v609_v6 = vadd.f32 %v2208_v51, %v387_v3 }
 0x145   :  { %v672_v31 = vadd.f32 %v2243_v26, %v640_v5  ;;  %v641_v8 = vadd.f32 %v609_v6, %v375_v49  ;;  %1047 = vmatprep.mubr.bf16.mxu1 %v723_v4  ;;  %1855 = vmatprep.mubr.bf16.mxu0 %v723_v4 }
 0x146   :  { %1048 = vmatmul.mubr.bf16.gmra.mrb[76].mxu1 %v722_v56 }
 0x147   :  { %v673_v38 = vadd.f32 %v2248_v33, %v641_v8  ;;  %v391_v10 = vpop.f32.mrb[52].mxu0  ;;  %v704_v11 = vmax.f32 %v672_v31, 0.0 }
 0x148   :  { %v393_v60 = vpop.f32.mrb[53].mxu0 }
 0x149   :  { %v705_v2 = vmax.f32 %v673_v38, 0.0  ;;  %v610_v12 = vadd.f32 %v2208_v51, %v393_v60  ;;  %v395_v13 = vpop.f32.mrb[54].mxu0 }
 0x14a   :  { %v397_v15 = vpop.f32.mrb[55].mxu0 }
 0x14b   :  { %v642_v17 = vadd.f32 %v610_v12, %v381_v58  ;;  %v611_v18 = vadd.f32 %v2208_v51, %v397_v15  ;;  %v724_v19 = vpack.c.bf16 %v705_v2, %v704_v11 }
 0x14d   :  { %v674_v26 = vadd.f32 %v642_v17, %v2258_v50  ;;  %v643_v21 = vadd.f32 %v611_v18, %v385_v1  ;;  %1055 = vmatprep.mubr.bf16.mxu1 %v724_v19  ;;  %1856 = vmatmul.mubr.bf16.gmra.mrb[84].mxu0 %v724_v19 }
 0x14e   :  { %1056 = vmatmul.mubr.bf16.gmra.mrb[80].mxu1 %v723_v4 }
 0x14f   :  { %v675_v33 = vadd.f32 %v643_v21, %v2263_v57  ;;  %v401_v22 = vpop.f32.mrb[56].mxu0  ;;  %v706_v24 = vmax.f32 %v674_v26, 0.0 }
 0x150   :  { %v403_v23 = vpop.f32.mrb[57].mxu0 }
 0x151   :  { %v707_v55 = vmax.f32 %v675_v33, 0.0  ;;  %v612_v25 = vadd.f32 %v2208_v51, %v403_v23  ;;  %v405_v62 = vpop.f32.mrb[58].mxu0 }
 0x152   :  { %v407_v27 = vpop.f32.mrb[59].mxu0 }
 0x153   :  { %v725_v28 = vpack.c.bf16 %v707_v55, %v706_v24  ;;  %v644_v29 = vadd.f32 %v612_v25, %v391_v10  ;;  %v613_v30 = vadd.f32 %v2208_v51, %v407_v27  ;;  %v1320_v24 = vld [vmem:[%s2392_s6] sm:$0xff]  ;;  %v1322_v25 = vld [vmem:[%s2392_s6 + $0x10] sm:$0xff] }
 0x154   :  { %1330 = vperm.xlu0 %1894, %v1320_v24   ;;  %1340 = vperm.xlu1 %1895, %v1322_v25  }
 0x155   :  { %v676_v50 = vadd.f32 %v2255_v45, %v644_v29  ;;  %v645_v32 = vadd.f32 %v613_v30, %v395_v13  ;;  %1063 = vmatprep.mubr.bf16.mxu1 %v725_v28  ;;  %1859 = vmatprep.mubr.bf16.mxu0 %v725_v28  ;;  %v1323_v30 = vld [vmem:[%s2392_s6 + $0x18] sm:$0xff] }
 0x156   :  { %1064 = vmatmul.mubr.bf16.gmra.mrb[84].mxu1 %v724_v19 }
 0x157   :  { %v677_v57 = vadd.f32 %v2260_v53, %v645_v32  ;;  %v411_v34 = vpop.f32.mrb[60].mxu0  ;;  %v708_v36 = vmax.f32 %v676_v50, 0.0 }
 0x158   :  { %v412_v35 = vpop.f32.mrb[61].mxu0  ;;  %1345 = vperm.xlu1 %1895, %v1323_v30  }
 0x159   :  { %v709_v39 = vmax.f32 %v677_v57, 0.0  ;;  %v614_v40 = vadd.f32 %v2208_v51, %v412_v35  ;;  %v414_v14 = vpop.f32.mrb[62].mxu0  ;;  %v1324_v57 = vld [vmem:[%s2392_s6 + $0x20] sm:$0xff] }
 0x15a   :  { %v415_v41 = vpop.f32.mrb[63].mxu0 }
 0x15b   :  { %v646_v20 = vadd.f32 %v614_v40, %v401_v22  ;;  %v615_v42 = vadd.f32 %v2208_v51, %v415_v41  ;;  %v726_v43 = vpack.c.bf16 %v709_v39, %v708_v36  ;;  %v1325_v36 = vld [vmem:[%s2392_s6 + $0x28] sm:$0xff] }
 0x15c   :  { %1355 = vperm.xlu1 %1895, %v1325_v36  }
 0x15d   :  { %v647_v46 = vadd.f32 %v615_v42, %v405_v62  ;;  %1071 = vmatprep.mubr.bf16.mxu1 %v726_v43  ;;  %1860 = vmatmul.mubr.bf16.gmra.mrb[88].mxu0 %v726_v43  ;;  %v710_v45 = vmax.f32 %v646_v20, 0.0 }
 0x15e   :  { %1072 = vmatmul.mubr.bf16.gmra.mrb[88].mxu1 %v725_v28  ;;  %v1321_v28 = vld [vmem:[%s2392_s6 + $0x8] sm:$0xff] }
 0x15f   :  { %v711_v47 = vmax.f32 %v647_v46, 0.0  ;;  %1335 = vperm.xlu0 %1894, %v1321_v28  }
 0x161   :  { %v727_v48 = vpack.c.bf16 %v711_v47, %v710_v45 }
 0x163   :  { %1079 = vmatprep.mubr.bf16.mxu1 %v727_v48  ;;  %1863 = vmatprep.mubr.bf16.mxu0 %v727_v48 }
 0x164   :  { %1350 = vperm.xlu0 %1894, %v1324_v57  }
 0x165   :  { %1864 = vmatmul.mubr.bf16.gmra.mrb[92].mxu0 %v1969_v7  ;;  %v2304_v7 = vld [vmem:[%s2390_s4] ss:$0 sm:$0xff] }
 0x166   :  { %1080 = vmatmul.mubr.bf16.gmra.mrb[92].mxu1 %v726_v43  ;;  %1869 = vmatprep.mubr.bf16.mxu0 %v1940_v44 }
 0x1bf   :  { %v1655_v53 = vpop.f32.mrb[32].mxu1 }
 0x1c0   :  { %v1656_v49 = vpop.f32.mrb[33].mxu1 }
 0x1c1   :  { %v1657_v52 = vadd.f32 %v1656_v49, %v1655_v53  ;;  %v1658_v37 = vpop.f32.mrb[34].mxu1  ;;  %v1326_v49 = vld [vmem:[%s2392_s6 + $0x30] sm:$0xff] }
 0x1c2   :  { %v1659_v54 = vpop.f32.mrb[35].mxu1  ;;  %1360 = vperm.xlu0 %1894, %v1326_v49  }
 0x1c3   :  { %v1660_v56 = vadd.f32 %v1659_v54, %v1658_v37  ;;  %v962_v1 = vadd.f32 %v1657_v52, %v2304_v7 }
 0x1c5   :  { %v965_v10 = vadd.f32 %v1660_v56, %v2304_v7  ;;  %v1327_v56 = vld [vmem:[%s2392_s6 + $0x38] sm:$0xff] }
 0x1c6   :  { %1365 = vperm.xlu1 %1895, %v1327_v56  }
 0x1c9   :  { %v1661_v51 = vpop.f32.mrb[36].mxu1 }
 0x1ca   :  { %v1662_v9 = vpop.f32.mrb[37].mxu1 }
 0x1cb   :  { %v1663_v16 = vadd.f32 %v1662_v9, %v1661_v51  ;;  %v1664_v58 = vpop.f32.mrb[38].mxu1 }
 0x1cc   :  { %v1665_v59 = vpop.f32.mrb[39].mxu1 }
 0x1cd   :  { %v1666_v61 = vadd.f32 %v1665_v59, %v1664_v58  ;;  %v970_v63 = vadd.f32 %v1663_v16, %v2304_v7  ;;  %v1470_v58 = vld [vmem:[#allocation2] sm:$0x1] }
 0x1ce   :  { %1473 = vperm.xlu0 %1894, %v1470_v58  }
 0x1cf   :  { %v973_v6 = vadd.f32 %v1666_v61, %v2304_v7 }
 0x1d0   :  { %v1837_v0 = vpop.f32.mrb[64].mxu0 }
 0x1d1   :  { %v1131_v3 = vadd.f32 %v1837_v0, %v970_v63  ;;  %v1667_v4 = vpop.f32.mrb[40].mxu1  ;;  %v1122_v5 = vpop.f32.mrb[65].mxu0 }
 0x1d2   :  { %v1123_v31 = vadd.f32 %v1122_v5, %v962_v1  ;;  %v1668_v8 = vpop.f32.mrb[41].mxu1  ;;  %v1838_v38 = vpop.f32.mrb[66].mxu0 }
 0x1d3   :  { %v1251_v60 = vmax.f32 %v1131_v3, 0.0  ;;  %v1669_v11 = vadd.f32 %v1668_v8, %v1667_v4  ;;  %v1134_v2 = vadd.f32 %v1838_v38, %v973_v6  ;;  %v1670_v12 = vpop.f32.mrb[42].mxu1  ;;  %v1125_v13 = vpop.f32.mrb[67].mxu0 }
 0x1d4   :  { %v1249_v15 = vmax.f32 %v1123_v31, 0.0  ;;  %v1126_v17 = vadd.f32 %v1125_v13, %v965_v10  ;;  %v1671_v18 = vpop.f32.mrb[43].mxu1 }
 0x1d5   :  { %v1252_v19 = vmax.f32 %v1134_v2, 0.0  ;;  %v1672_v26 = vadd.f32 %v1671_v18, %v1670_v12  ;;  %v978_v35 = vadd.f32 %v1669_v11, %v2304_v7 }
 0x1d6   :  { %v1281_v21 = vadd.f32 %v1251_v60, %v1249_v15  ;;  %v1250_v33 = vmax.f32 %v1126_v17, 0.0 }
 0x1d7   :  { %v981_v46 = vadd.f32 %v1672_v26, %v2304_v7 }
 0x1d8   :  { %v1296_v22 = vadd.f32 %v1252_v19, %v1250_v33 }
 0x1d9   :  { %v1673_v23 = vpop.f32.mrb[44].mxu1 }
 0x1da   :  { %v1674_v55 = vpop.f32.mrb[45].mxu1 }
 0x1db   :  { %v1675_v62 = vadd.f32 %v1674_v55, %v1673_v23  ;;  %v1676_v27 = vpop.f32.mrb[46].mxu1 }
 0x1dc   :  { %v1677_v29 = vpop.f32.mrb[47].mxu1 }
 0x1dd   :  { %v1678_v50 = vadd.f32 %v1677_v29, %v1676_v27  ;;  %v986_v32 = vadd.f32 %v1675_v62, %v2304_v7 }
 0x1df   :  { %v989_v41 = vadd.f32 %v1678_v50, %v2304_v7 }
 0x1e0   :  { %v1841_v34 = vpop.f32.mrb[68].mxu0 }
 0x1e1   :  { %v1147_v39 = vadd.f32 %v1841_v34, %v986_v32  ;;  %v1679_v40 = vpop.f32.mrb[48].mxu1  ;;  %v1138_v14 = vpop.f32.mrb[69].mxu0 }
 0x1e2   :  { %v1139_v20 = vadd.f32 %v1138_v14, %v978_v35  ;;  %v1680_v42 = vpop.f32.mrb[49].mxu1  ;;  %v1842_v43 = vpop.f32.mrb[70].mxu0 }
 0x1e3   :  { %v1681_v45 = vadd.f32 %v1680_v42, %v1679_v40  ;;  %v1150_v47 = vadd.f32 %v1842_v43, %v989_v41  ;;  %v1682_v48 = vpop.f32.mrb[50].mxu1  ;;  %v1141_v53 = vpop.f32.mrb[71].mxu0  ;;  %v1255_v9 = vmax.f32 %v1147_v39, 0.0 }
 0x1e4   :  { %v1253_v52 = vmax.f32 %v1139_v20, 0.0  ;;  %v1142_v37 = vadd.f32 %v1141_v53, %v981_v46  ;;  %v1683_v54 = vpop.f32.mrb[51].mxu1 }
 0x1e5   :  { %v1684_v51 = vadd.f32 %v1683_v54, %v1682_v48  ;;  %v1256_v59 = vmax.f32 %v1150_v47, 0.0  ;;  %v994_v10 = vadd.f32 %v1681_v45, %v2304_v7 }
 0x1e6   :  { %v1282_v44 = vadd.f32 %v1281_v21, %v1253_v52  ;;  %v1254_v16 = vmax.f32 %v1142_v37, 0.0 }
 0x1e7   :  { %v997_v18 = vadd.f32 %v1684_v51, %v2304_v7 }
 0x1e8   :  { %v1297_v61 = vadd.f32 %v1296_v22, %v1254_v16  ;;  %v1283_v63 = vadd.f32 %v1282_v44, %v1255_v9 }
 0x1e9   :  { %v1685_v0 = vpop.f32.mrb[52].mxu1 }
 0x1ea   :  { %v1686_v1 = vpop.f32.mrb[53].mxu1  ;;  %v1298_v3 = vadd.f32 %v1297_v61, %v1256_v59 }
 0x1eb   :  { %v1687_v4 = vadd.f32 %v1686_v1, %v1685_v0  ;;  %v1688_v5 = vpop.f32.mrb[54].mxu1 }
 0x1ec   :  { %v1689_v6 = vpop.f32.mrb[55].mxu1 }
 0x1ed   :  { %v1690_v31 = vadd.f32 %v1689_v6, %v1688_v5  ;;  %v1002_v8 = vadd.f32 %v1687_v4, %v2304_v7 }
 0x1ef   :  { %v1005_v12 = vadd.f32 %v1690_v31, %v2304_v7 }
 0x1f0   :  { %v1845_v38 = vpop.f32.mrb[72].mxu0 }
 0x1f1   :  { %v1163_v60 = vadd.f32 %v1845_v38, %v1002_v8  ;;  %v1691_v11 = vpop.f32.mrb[56].mxu1  ;;  %v1154_v2 = vpop.f32.mrb[73].mxu0 }
 0x1f2   :  { %v1155_v13 = vadd.f32 %v1154_v2, %v994_v10  ;;  %v1692_v15 = vpop.f32.mrb[57].mxu1  ;;  %v1846_v17 = vpop.f32.mrb[74].mxu0 }
 0x1f3   :  { %v1693_v19 = vadd.f32 %v1692_v15, %v1691_v11  ;;  %v1166_v26 = vadd.f32 %v1846_v17, %v1005_v12  ;;  %v1694_v21 = vpop.f32.mrb[58].mxu1  ;;  %v1157_v33 = vpop.f32.mrb[75].mxu0  ;;  %v1259_v25 = vmax.f32 %v1163_v60, 0.0 }
 0x1f4   :  { %v1257_v22 = vmax.f32 %v1155_v13, 0.0  ;;  %v1158_v23 = vadd.f32 %v1157_v33, %v997_v18  ;;  %v1695_v24 = vpop.f32.mrb[59].mxu1 }
 0x1f5   :  { %v1696_v55 = vadd.f32 %v1695_v24, %v1694_v21  ;;  %v1260_v28 = vmax.f32 %v1166_v26, 0.0  ;;  %v1010_v41 = vadd.f32 %v1693_v19, %v2304_v7 }
 0x1f6   :  { %v1284_v62 = vadd.f32 %v1283_v63, %v1257_v22  ;;  %v1258_v27 = vmax.f32 %v1158_v23, 0.0 }
 0x1f7   :  { %v1013_v53 = vadd.f32 %v1696_v55, %v2304_v7 }
 0x1f8   :  { %v1299_v29 = vadd.f32 %v1298_v3, %v1258_v27  ;;  %v1285_v30 = vadd.f32 %v1284_v62, %v1259_v25 }
 0x1f9   :  { %v1697_v50 = vpop.f32.mrb[60].mxu1 }
 0x1fa   :  { %v1698_v32 = vpop.f32.mrb[61].mxu1  ;;  %v1300_v57 = vadd.f32 %v1299_v29, %v1260_v28 }
 0x1fb   :  { %v1699_v34 = vadd.f32 %v1698_v32, %v1697_v50  ;;  %v1700_v35 = vpop.f32.mrb[62].mxu1 }
 0x1fc   :  { %v1701_v36 = vpop.f32.mrb[63].mxu1 }
 0x1fd   :  { %v1702_v39 = vadd.f32 %v1701_v36, %v1700_v35  ;;  %v1018_v40 = vadd.f32 %v1699_v34, %v2304_v7 }
 0x1ff   :  { %v1021_v46 = vadd.f32 %v1702_v39, %v2304_v7 }
 0x200   :  { %v1849_v14 = vpop.f32.mrb[76].mxu0 }
 0x201   :  { %v1179_v20 = vadd.f32 %v1849_v14, %v1018_v40  ;;  %v1703_v42 = vpop.f32.mrb[64].mxu1  ;;  %v1170_v43 = vpop.f32.mrb[77].mxu0 }
 0x202   :  { %v1171_v45 = vadd.f32 %v1170_v43, %v1010_v41  ;;  %v1704_v47 = vpop.f32.mrb[65].mxu1  ;;  %v1850_v48 = vpop.f32.mrb[78].mxu0 }
 0x203   :  { %v1705_v49 = vadd.f32 %v1704_v47, %v1703_v42  ;;  %v1182_v52 = vadd.f32 %v1850_v48, %v1021_v46  ;;  %v1706_v37 = vpop.f32.mrb[66].mxu1  ;;  %v1173_v54 = vpop.f32.mrb[79].mxu0  ;;  %v1263_v16 = vmax.f32 %v1179_v20, 0.0 }
 0x204   :  { %v1261_v56 = vmax.f32 %v1171_v45, 0.0  ;;  %v1174_v51 = vadd.f32 %v1173_v54, %v1013_v53  ;;  %v1707_v9 = vpop.f32.mrb[67].mxu1 }
 0x205   :  { %v1708_v44 = vadd.f32 %v1707_v9, %v1706_v37  ;;  %v1264_v61 = vmax.f32 %v1182_v52, 0.0  ;;  %v1026_v60 = vadd.f32 %v1705_v49, %v2304_v7 }
 0x206   :  { %v1286_v58 = vadd.f32 %v1285_v30, %v1261_v56  ;;  %v1262_v59 = vmax.f32 %v1174_v51, 0.0 }
 0x207   :  { %v1029_v19 = vadd.f32 %v1708_v44, %v2304_v7 }
 0x208   :  { %v1301_v63 = vadd.f32 %v1300_v57, %v1262_v59  ;;  %v1287_v0 = vadd.f32 %v1286_v58, %v1263_v16 }
 0x209   :  { %v1709_v1 = vpop.f32.mrb[68].mxu1 }
 0x20a   :  { %v1710_v3 = vpop.f32.mrb[69].mxu1  ;;  %v1302_v4 = vadd.f32 %v1301_v63, %v1264_v61 }
 0x20b   :  { %v1711_v5 = vadd.f32 %v1710_v3, %v1709_v1  ;;  %v1712_v6 = vpop.f32.mrb[70].mxu1 }
 0x20c   :  { %v1713_v31 = vpop.f32.mrb[71].mxu1 }
 0x20d   :  { %v1714_v8 = vadd.f32 %v1713_v31, %v1712_v6  ;;  %v1034_v38 = vadd.f32 %v1711_v5, %v2304_v7 }
 0x20f   :  { %v1037_v13 = vadd.f32 %v1714_v8, %v2304_v7 }
 0x210   :  { %v1853_v10 = vpop.f32.mrb[80].mxu0 }
 0x211   :  { %v1195_v11 = vadd.f32 %v1853_v10, %v1034_v38  ;;  %v1715_v2 = vpop.f32.mrb[72].mxu1  ;;  %v1186_v12 = vpop.f32.mrb[81].mxu0 }
 0x212   :  { %v1187_v15 = vadd.f32 %v1186_v12, %v1026_v60  ;;  %v1716_v17 = vpop.f32.mrb[73].mxu1  ;;  %v1854_v18 = vpop.f32.mrb[82].mxu0 }
 0x213   :  { %v1717_v26 = vadd.f32 %v1716_v17, %v1715_v2  ;;  %v1198_v21 = vadd.f32 %v1854_v18, %v1037_v13  ;;  %v1718_v33 = vpop.f32.mrb[74].mxu1  ;;  %v1189_v22 = vpop.f32.mrb[83].mxu0  ;;  %v1267_v62 = vmax.f32 %v1195_v11, 0.0 }
 0x214   :  { %v1265_v23 = vmax.f32 %v1187_v15, 0.0  ;;  %v1190_v24 = vadd.f32 %v1189_v22, %v1029_v19  ;;  %v1719_v55 = vpop.f32.mrb[75].mxu1 }
 0x215   :  { %v1720_v25 = vadd.f32 %v1719_v55, %v1718_v33  ;;  %v1268_v29 = vmax.f32 %v1198_v21, 0.0  ;;  %v1042_v20 = vadd.f32 %v1717_v26, %v2304_v7 }
 0x216   :  { %v1288_v27 = vadd.f32 %v1287_v0, %v1265_v23  ;;  %v1266_v28 = vmax.f32 %v1190_v24, 0.0 }
 0x217   :  { %v1045_v49 = vadd.f32 %v1720_v25, %v2304_v7 }
 0x218   :  { %v1303_v30 = vadd.f32 %v1302_v4, %v1266_v28  ;;  %v1289_v50 = vadd.f32 %v1288_v27, %v1267_v62 }
 0x219   :  { %v1721_v32 = vpop.f32.mrb[76].mxu1 }
 0x21a   :  { %v1722_v57 = vpop.f32.mrb[77].mxu1  ;;  %v1304_v34 = vadd.f32 %v1303_v30, %v1268_v29 }
 0x21b   :  { %v1723_v35 = vadd.f32 %v1722_v57, %v1721_v32  ;;  %v1724_v36 = vpop.f32.mrb[78].mxu1 }
 0x21c   :  { %v1725_v39 = vpop.f32.mrb[79].mxu1 }
 0x21d   :  { %v1726_v40 = vadd.f32 %v1725_v39, %v1724_v36  ;;  %v1050_v14 = vadd.f32 %v1723_v35, %v2304_v7 }
 0x21f   :  { %v1053_v45 = vadd.f32 %v1726_v40, %v2304_v7 }
 0x220   :  { %v1857_v41 = vpop.f32.mrb[84].mxu0 }
 0x221   :  { %v1211_v42 = vadd.f32 %v1857_v41, %v1050_v14  ;;  %v1727_v43 = vpop.f32.mrb[80].mxu1  ;;  %v1202_v46 = vpop.f32.mrb[85].mxu0 }
 0x222   :  { %v1203_v47 = vadd.f32 %v1202_v46, %v1042_v20  ;;  %v1728_v48 = vpop.f32.mrb[81].mxu1  ;;  %v1858_v53 = vpop.f32.mrb[86].mxu0 }
 0x223   :  { %v1729_v52 = vadd.f32 %v1728_v48, %v1727_v43  ;;  %v1214_v37 = vadd.f32 %v1858_v53, %v1053_v45  ;;  %v1730_v54 = vpop.f32.mrb[82].mxu1  ;;  %v1205_v56 = vpop.f32.mrb[87].mxu0  ;;  %v1271_v58 = vmax.f32 %v1211_v42, 0.0 }
 0x224   :  { %v1269_v51 = vmax.f32 %v1203_v47, 0.0  ;;  %v1206_v9 = vadd.f32 %v1205_v56, %v1045_v49  ;;  %v1731_v44 = vpop.f32.mrb[83].mxu1 }
 0x225   :  { %v1732_v16 = vadd.f32 %v1731_v44, %v1730_v54  ;;  %v1272_v63 = vmax.f32 %v1214_v37, 0.0  ;;  %v1058_v11 = vadd.f32 %v1729_v52, %v2304_v7 }
 0x226   :  { %v1290_v59 = vadd.f32 %v1289_v50, %v1269_v51  ;;  %v1270_v61 = vmax.f32 %v1206_v9, 0.0 }
 0x227   :  { %v1061_v26 = vadd.f32 %v1732_v16, %v2304_v7 }
 0x228   :  { %v1305_v0 = vadd.f32 %v1304_v34, %v1270_v61  ;;  %v1291_v1 = vadd.f32 %v1290_v59, %v1271_v58 }
 0x229   :  { %v1733_v3 = vpop.f32.mrb[84].mxu1 }
 0x22a   :  { %v1734_v4 = vpop.f32.mrb[85].mxu1  ;;  %v1306_v5 = vadd.f32 %v1305_v0, %v1272_v63  ;;  %v1941_v63 = vld [vmem:[%s2391_s5 + $0x8] sm:$0xff]   ;;  %v1942_v0 = vld [vmem:[%s2391_s5 + $0x10] sm:$0xff]  }
 0x22b   :  { %v1735_v6 = vadd.f32 %v1734_v4, %v1733_v3  ;;  %v1736_v31 = vpop.f32.mrb[86].mxu1  ;;  %v1331_v3 = vpop.permute.xlu0 %1330 }
 0x22c   :  { %v1737_v8 = vpop.f32.mrb[87].mxu1  ;;  %v1341_v4 = vpop.permute.xlu1 %1340 }
 0x22d   :  { %v1738_v38 = vadd.f32 %v1737_v8, %v1736_v31  ;;  %v1066_v10 = vadd.f32 %v1735_v6, %v2304_v7 }
 0x22f   :  { %v1069_v15 = vadd.f32 %v1738_v38, %v2304_v7 }
 0x230   :  { %v1861_v60 = vpop.f32.mrb[88].mxu0  ;;  %v1346_v6 = vpop.permute.xlu1 %1345 }
 0x231   :  { %v1227_v2 = vadd.f32 %v1861_v60, %v1066_v10  ;;  %v1739_v12 = vpop.f32.mrb[88].mxu1  ;;  %v1218_v13 = vpop.f32.mrb[89].mxu0 }
 0x232   :  { %v1219_v17 = vadd.f32 %v1218_v13, %v1058_v11  ;;  %v1740_v18 = vpop.f32.mrb[89].mxu1  ;;  %v1862_v19 = vpop.f32.mrb[90].mxu0 }
 0x233   :  { %v1741_v21 = vadd.f32 %v1740_v18, %v1739_v12  ;;  %v1230_v33 = vadd.f32 %v1862_v19, %v1069_v15  ;;  %v1742_v22 = vpop.f32.mrb[90].mxu1  ;;  %v1221_v23 = vpop.f32.mrb[91].mxu0  ;;  %v1275_v27 = vmax.f32 %v1227_v2, 0.0 }
 0x234   :  { %v1273_v24 = vmax.f32 %v1219_v17, 0.0  ;;  %v1222_v55 = vadd.f32 %v1221_v23, %v1061_v26  ;;  %v1743_v25 = vpop.f32.mrb[91].mxu1  ;;  %v1356_v15 = vpop.permute.xlu1 %1355 }
 0x235   :  { %v1744_v62 = vadd.f32 %v1743_v25, %v1742_v22  ;;  %v1276_v30 = vmax.f32 %v1230_v33, 0.0  ;;  %v1074_v57 = vadd.f32 %v1741_v21, %v2304_v7 }
 0x236   :  { %v1292_v28 = vadd.f32 %v1291_v1, %v1273_v24  ;;  %v1274_v29 = vmax.f32 %v1222_v55, 0.0  ;;  %v1970_v1 = vmov 0.0  }
 0x237   :  { %v1077_v41 = vadd.f32 %v1744_v62, %v2304_v7  ;;  %1877 = vmatprep.subr.bf16.mxu1 %v1970_v1  ;;  %1885 = vmatprep.mubr.msk.bf16.mxu1 %vm1971_vm3, %v1970_v1 }
 0x238   :  { %v1307_v50 = vadd.f32 %v1306_v5, %v1274_v29  ;;  %v1865_v32 = vpop.f32.mrb[92].mxu0  ;;  %v1293_v34 = vadd.f32 %v1292_v28, %v1275_v27  ;;  %v1336_v5 = vpop.permute.xlu0 %1335 }
 0x239   :  { %v1745_v35 = vpop.f32.mrb[92].mxu1  ;;  %v1234_v36 = vpop.f32.mrb[93].mxu0 }
 0x23a   :  { %v1235_v39 = vadd.f32 %v1234_v36, %v1074_v57  ;;  %v1746_v40 = vpop.f32.mrb[93].mxu1  ;;  %v1866_v14 = vpop.f32.mrb[94].mxu0  ;;  %v1308_v20 = vadd.f32 %v1307_v50, %v1276_v30 }
 0x23b   :  { %v1747_v42 = vadd.f32 %v1746_v40, %v1745_v35  ;;  %v1748_v43 = vpop.f32.mrb[94].mxu1  ;;  %v1237_v46 = vpop.f32.mrb[95].mxu0  ;;  %v1476_v40 = vlaneseq }
 0x23c   :  { %v1277_v45 = vmax.f32 %v1235_v39, 0.0  ;;  %v1238_v47 = vadd.f32 %v1237_v46, %v1077_v41  ;;  %v1749_v48 = vpop.f32.mrb[95].mxu1  ;;  %v1351_v10 = vpop.permute.xlu0 %1350  ;;  %v1469_v39 = vld [vmem:[%s2393_s7] sm:$0x1]  ;;  %s1948_s7 = scalar_lea.vmem %s1533_s2, 32 }
 0x23d   :  { %v1082_v53 = vadd.f32 %v1747_v42, %v2304_v7  ;;  %v1750_v49 = vadd.f32 %v1749_v48, %v1748_v43  ;;  %p1950_p2 = scmp.lt.s32.totalorder %s1948_s7, %s1944_s3 }
 0x23e   :  { %v1294_v52 = vadd.f32 %v1293_v34, %v1277_v45  ;;  %v1278_v37 = vmax.f32 %v1238_v47, 0.0 }
 0x23f   :  { %v1243_v54 = vadd.f32 %v1865_v32, %v1082_v53  ;;  %v1085_v56 = vadd.f32 %v1750_v49, %v2304_v7  ;;  %v1943_v7 = vld [vmem:[%s2391_s5 + $0x18] sm:$0xff]   ;;  %p1951_p3 = por %p1950_p2, %p1949_p1 }
 0x240   :  { %v1309_v51 = vadd.f32 %v1308_v20, %v1278_v37 }
 0x241   :  { %v1279_v9 = vmax.f32 %v1243_v54, 0.0  ;;  %v1246_v44 = vadd.f32 %v1866_v14, %v1085_v56  ;;  %v1361_v33 = vpop.permute.xlu0 %1360  ;;  %v1477_v14 = vshrl.u32 %v1476_v40, 7  ;;  %p1952_p4 = pnand %p1951_p3, %p1945_p0 }
 0x243   :  { %v1280_v16 = vmax.f32 %v1246_v44, 0.0  ;;  %v1295_v58 = vadd.f32 %v1294_v52, %v1279_v9  ;;  %v1478_v41 = vsub.s32 0, %v1477_v14 }
 0x245   :  { %v1310_v59 = vadd.f32 %v1309_v51, %v1280_v16  ;;  %v1366_v62 = vpop.permute.xlu1 %1365 }
 0x247   :  { %v1311_v61 = vpack.c.bf16 %v1310_v59, %v1295_v58 }
 0x249   :  { %1867 = vmatprep.subr.bf16.mxu0 %v1311_v61 }
 0x24a   :  { %1868 = vmatpush3.bf16.xpose.msra.mxu0 %v1311_v61 }
 0x24d   :  { %v1474_v20 = vpop.permute.xlu0 %1473 }
 0x24e   :  { %v1479_v42 = vrot.slane %v1474_v20, %v1478_v41 }
 0x251   :  { %1870 = vmatmul.mubr.bf16.vlgmr.msra.gmra.mrb[96].mxu0 %v1941_v63 }
 0x252   :  { %1873 = vmatprep.mubr.bf16.mxu0 %v1942_v0 }
 0x259   :  { %1874 = vmatmul.mubr.bf16.gmra.mrb[100].mxu0 %v1943_v7 }
 0x324   :  { %v1871_v31 = vpop.f32.mrb[96].mxu0 }
 0x325   :  { %v1435_v8 = vadd.f32 %v1871_v31, %v1341_v4  ;;  %v1426_v38 = vpop.f32.mrb[97].mxu0 }
 0x326   :  { %v1427_v60 = vadd.f32 %v1426_v38, %v1331_v3  ;;  %v1872_v11 = vpop.f32.mrb[98].mxu0 }
 0x327   :  { %v1438_v2 = vadd.f32 %v1872_v11, %v1346_v6  ;;  %v1429_v12 = vpop.f32.mrb[99].mxu0  ;;  %v1459_v17 = vmax.f32 %v1435_v8, 0.0 }
 0x328   :  { %v1430_v13 = vadd.f32 %v1429_v12, %v1336_v5  ;;  %v1457_v19 = vmax.f32 %v1427_v60, 0.0 }
 0x329   :  { %v1460_v18 = vmax.f32 %v1438_v2, 0.0 }
 0x32a   :  { %v1458_v26 = vmax.f32 %v1430_v13, 0.0 }
 0x32b   :  { %v1466_v21 = vpack.c.bf16 %v1460_v18, %v1459_v17 }
 0x32c   :  { %v1465_v22 = vpack.c.bf16 %v1458_v26, %v1457_v19  ;;  %v1875_v23 = vpop.f32.mrb[100].mxu0 }
 0x32d   :  { %v1451_v24 = vadd.f32 %v1875_v23, %v1361_v33  ;;  %v1442_v55 = vpop.f32.mrb[101].mxu0 }
 0x32e   :  { %v1443_v25 = vadd.f32 %v1442_v55, %v1351_v10  ;;  %v1876_v27 = vpop.f32.mrb[102].mxu0  ;;  %1878 = vmatpush3.bf16.msra.mxu1 %v1465_v22 }
 0x32f   :  { %v1454_v28 = vadd.f32 %v1876_v27, %v1366_v62  ;;  %v1445_v29 = vpop.f32.mrb[103].mxu0  ;;  %1879 = vmatprep.subr.bf16.mxu1 %v1970_v1  ;;  %v1463_v50 = vmax.f32 %v1451_v24, 0.0 }
 0x330   :  { %v1446_v30 = vadd.f32 %v1445_v29, %v1356_v15  ;;  %v1461_v57 = vmax.f32 %v1443_v25, 0.0 }
 0x331   :  { %v1464_v32 = vmax.f32 %v1454_v28, 0.0 }
 0x332   :  { %v1462_v34 = vmax.f32 %v1446_v30, 0.0  ;;  %1880 = vmatpush3.bf16.msra.mxu1 %v1466_v21 }
 0x333   :  { %v1468_v35 = vpack.c.bf16 %v1464_v32, %v1463_v50  ;;  %1881 = vmatprep.subr.bf16.mxu1 %v1970_v1 }
 0x334   :  { %v1467_v36 = vpack.c.bf16 %v1462_v34, %v1461_v57 }
 0x336   :  { %1882 = vmatpush3.bf16.msra.mxu1 %v1467_v36 }
 0x337   :  { %1883 = vmatprep.subr.bf16.mxu1 %v1970_v1 }
 0x33a   :  { %1884 = vmatpush3.bf16.msra.mxu1 %v1468_v35 }
 0x33d   :  { %1886 = vmatmul.mubr.msk.bf16.vlgmr.msra.gmra.mrb[96].mxu1 %vm1480_vm4, %v1469_v39 }
 0x410   :  { %v1518_v43 = vpop.f32.mrb[96].mxu1 }
 0x411   :  { %v1519_v46 = vadd.f32 %v1518_v43, %v1479_v42  ;;  %v1887_v45 = vpop.f32.mrb[97].mxu1 }
 0x412   :  { %v1521_v47 = vpop.f32.mrb[98].mxu1 }
 0x413   :  { %v1888_v48 = vpop.f32.mrb[99].mxu1  ;;  %1525 = vst.msk [vmem:[#allocation3] sm:$0x1] %vm1524_vm5, %v1519_v46 }
 0x414   :  { %1955 = shalt.err (!%p1952_p4)
}
 0x415   :  { %s1956_s4 = scalar_lea.hbm %s2395_s9, 16 }
 0x416   :  { %p1957_p5 = scmp.ne.s32.totalorder %s2395_s9, %s1956_s4  ;;  %p1960_p6 = scmp.lt.u32.totalorder %s1956_s4, %s2395_s9 }
 0x418   :  { %p1962_p7 = pnand %p1960_p6, %p1957_p5 }
 0x41a   :  { %1965 = shalt.err (!%p1962_p7)
}
 0x41b   :  { %1535 = dma.vmem_to_hbm [thread:$0]  %s1533_s2, 16, %s2395_s9, [#allocation4]  }
 0x41c   :  { %1966 = dma.done.wait [#allocation4], 16  }
 0x41d   :  { %1967 = vsyncadd [#allocation4], 4294967280 }
 0x41e   :  { %1539 = vsyncpa [#allocation4], 1 }

</bundles_post_ra>
